<compile_context>
chip_gen: v6e
topology: v6e:2x2x1
jax: 0.10.0
libtpu: 0.0.40
codegen_flags: <defaults>
</compile_context>

<pallas_src>
import functools

import jax
import jax.numpy as jnp
from jax import lax
from jax.experimental import pallas as pl
from jax.experimental.pallas import tpu as pltpu


# ----------------------------------------------------------------------------
# Pallas kernel
# ----------------------------------------------------------------------------
def _layer_norm_kernel(x_ref, gamma_ref, beta_ref, o_ref, *, variance):
    """x_ref/o_ref: (rows, d); gamma_ref/beta_ref: (1, d)."""
    x = x_ref[...].astype(jnp.float32)                    # (rows, d)
    u = jnp.mean(x, axis=-1, keepdims=True)               # (rows, 1)
    xc = x - u
    s = jnp.mean(xc * xc, axis=-1, keepdims=True)         # biased variance
    inv = lax.rsqrt(s + variance)                         # EUP rsqrt
    y = xc * inv
    o_ref[...] = (gamma_ref[...].astype(jnp.float32) * y
                  + beta_ref[...].astype(jnp.float32)).astype(o_ref.dtype)


# ----------------------------------------------------------------------------
# Wrapper
# ----------------------------------------------------------------------------
def _round_up(n, m):
    return ((n + m - 1) // m) * m


def layer_norm_pallas(x, gamma, beta, *, variance=1e-11, block_rows=512):
    """LayerNorm over the last dim. x: (..., d_model); gamma/beta: (d_model,)."""
    orig_shape = x.shape
    d = orig_shape[-1]
    x2 = x.reshape(-1, d)
    rows = x2.shape[0]

    # Biggest row tile that is still a multiple of the f32 sublane count (8);
    # the last block may be partial (masked stores handle the tail).
    br = min(block_rows, _round_up(rows, 8))
    grid = (pl.cdiv(rows, br),)

    gamma2 = gamma.reshape(1, d)
    beta2 = beta.reshape(1, d)

    out = pl.pallas_call(
        functools.partial(_layer_norm_kernel, variance=variance),
        out_shape=jax.ShapeDtypeStruct((rows, d), x.dtype),
        grid=grid,
        in_specs=[
            pl.BlockSpec((br, d), lambda i: (i, 0)),      # x rows tile
            pl.BlockSpec((1, d), lambda i: (0, 0)),       # gamma (resident)
            pl.BlockSpec((1, d), lambda i: (0, 0)),       # beta  (resident)
        ],
        out_specs=pl.BlockSpec((br, d), lambda i: (i, 0)),
        compiler_params=pltpu.CompilerParams(
            dimension_semantics=("parallel",)),
    )(x2, gamma2, beta2)
    return out.reshape(orig_shape)


# ----------------------------------------------------------------------------
# Pure-JAX reference (mirror of the PyTorch forward)
# ----------------------------------------------------------------------------
def _layer_norm_ref(x, gamma, beta, variance):
    u = jnp.mean(x, axis=-1, keepdims=True)
    s = jnp.mean((x - u) ** 2, axis=-1, keepdims=True)
    return gamma * ((x - u) / jnp.sqrt(s + variance)) + beta


# ----------------------------------------------------------------------------
if __name__ == "__main__":
    B, T, D_MODEL = 2, 8, 256       # batch, seq, d_model
    VARIANCE = 1e-11                # module default (epsilon inside the sqrt)

    key = jax.random.PRNGKey(0)
    k_x, k_g, k_b = jax.random.split(key, 3)

    x = jax.random.normal(k_x, (B, T, D_MODEL), jnp.float32)
    # Module initializes gamma=1, beta=0; perturb them so they are exercised.
    gamma = 1.0 + 0.1 * jax.random.normal(k_g, (D_MODEL,), jnp.float32)
    beta = 0.1 * jax.random.normal(k_b, (D_MODEL,), jnp.float32)

    fn = jax.jit(functools.partial(layer_norm_pallas, variance=VARIANCE))
    out = jax.block_until_ready(fn(x, gamma, beta))

    ref = _layer_norm_ref(x, gamma, beta, VARIANCE)
    assert out.shape == x.shape, out.shape
    assert jnp.allclose(out, ref, atol=1e-5, rtol=1e-5), \
        float(jnp.max(jnp.abs(out - ref)))

    print("KERNEL_OK")
</pallas_src>

<mosaic_0001>
module attributes {stable_mosaic.version = 11 : i64} {
  func.func @_layer_norm_kernel(%arg0: i32, %arg1: memref<16x256xf32, #tpu.memory_space<vmem>>, %arg2: memref<1x256xf32, #tpu.memory_space<vmem>>, %arg3: memref<1x256xf32, #tpu.memory_space<vmem>>, %arg4: memref<16x256xf32, #tpu.memory_space<vmem>>) attributes {dimension_semantics = [#tpu.dimension_semantics<parallel>], iteration_bounds = array<i64: 1>, scalar_prefetch = 0 : i64, scratch_operands = 0 : i64, tpu.core_type = #tpu.core_type<tc>, window_params = [{transform_indices = @transform_0, window_bounds = array<i64: 16, 256>}, {pipeline_mode = #tpu.pipeline_mode<synchronous>, transform_indices = @transform_1, window_bounds = array<i64: 1, 256>}, {pipeline_mode = #tpu.pipeline_mode<synchronous>, transform_indices = @transform_2, window_bounds = array<i64: 1, 256>}, {transform_indices = @transform_3, window_bounds = array<i64: 16, 256>}]} {
    %c0 = arith.constant 0 : index
    %c0_0 = arith.constant 0 : index
    %0 = vector.load %arg1[%c0, %c0_0] : memref<16x256xf32, #tpu.memory_space<vmem>>, vector<16x256xf32>
    %cst = arith.constant dense<0.000000e+00> : vector<16xf32>
    %1 = vector.multi_reduction <add>, %0, %cst [1] : vector<16x256xf32> to vector<16xf32>
    %2 = vector.shape_cast %1 : vector<16xf32> to vector<16x1xf32>
    %cst_1 = arith.constant 2.560000e+02 : f32
    %3 = vector.broadcast %cst_1 : f32 to vector<16x1xf32>
    %4 = arith.divf %2, %3 : vector<16x1xf32>
    %5 = vector.broadcast %4 : vector<16x1xf32> to vector<16x256xf32>
    %6 = arith.subf %0, %5 : vector<16x256xf32>
    %7 = arith.mulf %6, %6 : vector<16x256xf32>
    %cst_2 = arith.constant dense<0.000000e+00> : vector<16xf32>
    %8 = vector.multi_reduction <add>, %7, %cst_2 [1] : vector<16x256xf32> to vector<16xf32>
    %9 = vector.shape_cast %8 : vector<16xf32> to vector<16x1xf32>
    %cst_3 = arith.constant 2.560000e+02 : f32
    %10 = vector.broadcast %cst_3 : f32 to vector<16x1xf32>
    %11 = arith.divf %9, %10 : vector<16x1xf32>
    %cst_4 = arith.constant 9.99999996E-12 : f32
    %12 = vector.broadcast %cst_4 : f32 to vector<16x1xf32>
    %13 = arith.addf %11, %12 : vector<16x1xf32>
    %14 = math.rsqrt %13 : vector<16x1xf32>
    %15 = vector.broadcast %14 : vector<16x1xf32> to vector<16x256xf32>
    %16 = arith.mulf %6, %15 : vector<16x256xf32>
    %c0_5 = arith.constant 0 : index
    %c0_6 = arith.constant 0 : index
    %17 = vector.load %arg2[%c0_5, %c0_6] : memref<1x256xf32, #tpu.memory_space<vmem>>, vector<1x256xf32>
    %18 = vector.broadcast %17 : vector<1x256xf32> to vector<16x256xf32>
    %19 = arith.mulf %18, %16 : vector<16x256xf32>
    %c0_7 = arith.constant 0 : index
    %c0_8 = arith.constant 0 : index
    %20 = vector.load %arg3[%c0_7, %c0_8] : memref<1x256xf32, #tpu.memory_space<vmem>>, vector<1x256xf32>
    %21 = vector.broadcast %20 : vector<1x256xf32> to vector<16x256xf32>
    %22 = arith.addf %19, %21 : vector<16x256xf32>
    %c0_9 = arith.constant 0 : index
    %c0_10 = arith.constant 0 : index
    %23 = vector.load %arg4[%c0_9, %c0_10] : memref<16x256xf32, #tpu.memory_space<vmem>>, vector<16x256xf32>
    tpu.vector_store %arg4[%c0_9, %c0_10], %22 {strides = array<i32>} : memref<16x256xf32, #tpu.memory_space<vmem>>, vector<16x256xf32>,
    return
  }
  func.func @transform_0(%arg0: i32) -> (i32, i32) {
    %c0_i32 = arith.constant 0 : i32
    %c0_i32_0 = arith.constant 0 : i32
    return %arg0, %c0_i32 : i32, i32
  }
  func.func @transform_1(%arg0: i32) -> (i32, i32) {
    %c0_i32 = arith.constant 0 : i32
    %c0_i32_0 = arith.constant 0 : i32
    %c0_i32_1 = arith.constant 0 : i32
    return %c0_i32, %c0_i32_0 : i32, i32
  }
  func.func @transform_2(%arg0: i32) -> (i32, i32) {
    %c0_i32 = arith.constant 0 : i32
    %c0_i32_0 = arith.constant 0 : i32
    %c0_i32_1 = arith.constant 0 : i32
    return %c0_i32, %c0_i32_0 : i32, i32
  }
  func.func @transform_3(%arg0: i32) -> (i32, i32) {
    %c0_i32 = arith.constant 0 : i32
    %c0_i32_0 = arith.constant 0 : i32
    return %arg0, %c0_i32 : i32, i32
  }
}

</mosaic_0001>

<bundles_post_ra>
// kernel: layer_norm_pallas.1
= control target key start
LH: loop header
LB: loop body
LE: loop exit
PB: predicated region body
PF: predicated region fallthrough
CT: control target
= control target key end

     0   :  { %8 = vsyncpa [#allocation3], 0  ;;  %s213_s0 = inlined_call_operand.hbm [shape: f32[16,256], index: 0, kind: input, shape index: {}]   ;;  %s214_s1 = inlined_call_operand.vmem [shape: f32[1,256], index: 1, kind: input, shape index: {}]   ;;  %s215_s2 = inlined_call_operand.vmem [shape: f32[1,256], index: 2, kind: input, shape index: {}]   ;;  %s216_s3 = inlined_call_operand.hbm [shape: f32[16,256], index: 3, kind: output, shape index: {}]  }
   0x1   :  { %9 = vsyncpa [#allocation4], 0  ;;  %s171_s12 = smov [#allocation2]  }
   0x2   :  { %s15_s13 = sshll.u32 %s171_s12, 4  ;;  %s16_s13 = int_to_ptr.vmem [resolvable:$true] %s15_s13 }
   0x3   :  { %s135_s14 = scalar_lea.vmem %s16_s13, 512  ;;  %p140_p1 = scmp.lt.s32.totalorder %s16_s13, %s16_s13 }
   0x4   :  { %p136_p0 = scmp.ne.s32.totalorder %s16_s13, %s135_s14  ;;  %p141_p2 = scmp.lt.s32.totalorder %s135_s14, %s135_s14 }
   0x6   :  { %p142_p3 = por %p141_p2, %p140_p1 }
   0x8   :  { %p143_p4 = pnand %p142_p3, %p136_p0 }
   0xa   :  { %146 = shalt.err (!%p143_p4)
}
   0xb   :  { %s172_s15 = smov 256   ;;  %s173_s16 = smov 16  }
   0xc   :  { %21 = dma.hbm_to_vmem [thread:$0]  %s213_s0, 512, %s16_s13, [#allocation3], %s172_s15, %s172_s15, %s173_s16  }
   0xd   :  { %167 = dma.done.wait [#allocation3], 512  }
   0xe   :  { %168 = vsyncadd [#allocation3], 4294966784  ;;  %v29_v0 = vld [vmem:[#allocation2] sm:$0xff]  ;;  %v30_v1 = vld [vmem:[#allocation2 + $0x8] sm:$0xff]  ;;  %v68_v25 = vlaneseq  ;;  %s174_s22 = smov [#allocation5]  }
   0xf   :  { %v31_v2 = vld [vmem:[#allocation2 + $0x10] sm:$0xff]  ;;  %v33_v3 = vadd.f32 %v30_v1, %v29_v0  ;;  %v32_v4 = vld [vmem:[#allocation2 + $0x18] sm:$0xff]  ;;  %v66_v30 = vld [vmem:[%s214_s1] sm:$0x3]  ;;  %s107_s1 = sshll.u32 %s174_s22, 4  ;;  %s108_s1 = int_to_ptr.vmem [resolvable:$true] %s107_s1 }
  0x10   :  { %v36_v5 = vadd.f32 %v32_v4, %v31_v2  ;;  %v69_v27 = vshrl.u32 %v68_v25, 7  ;;  %v82_v31 = vld [vmem:[%s215_s2] sm:$0x3]  ;;  %s147_s2 = scalar_lea.vmem %s108_s1, 512  ;;  %p152_p6 = scmp.lt.s32.totalorder %s108_s1, %s108_s1 }
  0x11   :  { %34 = vadd.xlane.f32.xlu0 %v33_v3  ;;  %p148_p5 = scmp.ne.s32.totalorder %s108_s1, %s147_s2  ;;  %p153_p7 = scmp.lt.s32.totalorder %s147_s2, %s147_s2 }
  0x12   :  { %v70_v28 = vsub.s32 0, %v69_v27  ;;  %v74_v29 = vsub.s32 1, %v69_v27 }
  0x13   :  { %p154_p8 = por %p153_p7, %p152_p6 }
  0x14   :  { %v71_v32 = vrot.slane %v66_v30, %v70_v28  ;;  %v75_v33 = vrot.slane %v66_v30, %v74_v29  ;;  %v87_v37 = vrot.slane %v82_v31, %v70_v28  ;;  %v91_v38 = vrot.slane %v82_v31, %v74_v29 }
  0x15   :  { %37 = vadd.xlane.f32.xlu0 %v36_v5  ;;  %p155_p9 = pnand %p154_p8, %p148_p5 }
  0x9a   :  { %v35_v6 = vpop.xlane.xlu0 %34 }
  0x9b   :  { %v40_v7 = vmul.f32 0.00390625, %v35_v6 }
  0x9d   :  { %v42_v8 = vsub.f32 %v29_v0, %v40_v7  ;;  %v43_v9 = vsub.f32 %v30_v1, %v40_v7 }
  0x9e   :  { %v38_v10 = vpop.xlane.xlu0 %37 }
  0x9f   :  { %v41_v11 = vmul.f32 0.00390625, %v38_v10  ;;  %v46_v12 = vmul.f32 %v42_v8, %v42_v8  ;;  %v47_v13 = vmul.f32 %v43_v9, %v43_v9 }
  0xa1   :  { %v44_v14 = vsub.f32 %v31_v2, %v41_v11  ;;  %v45_v15 = vsub.f32 %v32_v4, %v41_v11  ;;  %v50_v16 = vadd.f32 %v47_v13, %v46_v12 }
  0xa3   :  { %51 = vadd.xlane.f32.xlu1 %v50_v16  ;;  %v48_v17 = vmul.f32 %v44_v14, %v44_v14  ;;  %v49_v18 = vmul.f32 %v45_v15, %v45_v15 }
  0xa5   :  { %v53_v19 = vadd.f32 %v49_v18, %v48_v17 }
  0xa7   :  { %54 = vadd.xlane.f32.xlu1 %v53_v19 }
 0x12c   :  { %v52_v20 = vpop.xlane.xlu1 %51 }
 0x12d   :  { %v56_v21 = vmul.f32 0.00390625, %v52_v20 }
 0x12f   :  { %v58_v22 = vadd.f32 1e-11, %v56_v21 }
 0x130   :  { %v55_v23 = vpop.xlane.xlu1 %54 }
 0x131   :  { %123 = vrsqrt.f32 %v58_v22  ;;  %v57_v24 = vmul.f32 0.00390625, %v55_v23 }
 0x133   :  { %v59_v26 = vadd.f32 1e-11, %v57_v24 }
 0x135   :  { %125 = vrsqrt.f32 %v59_v26 }
 0x13e   :  { %v124_v34 = vpop.eup %123 }
 0x13f   :  { %v62_v35 = vmul.f32 %v124_v34, %v42_v8  ;;  %v63_v36 = vmul.f32 %v124_v34, %v43_v9 }
 0x141   :  { %v78_v39 = vmul.f32 %v71_v32, %v62_v35  ;;  %v79_v40 = vmul.f32 %v75_v33, %v63_v36 }
 0x142   :  { %v126_v41 = vpop.eup %125 }
 0x143   :  { %v64_v42 = vmul.f32 %v126_v41, %v44_v14  ;;  %v65_v43 = vmul.f32 %v126_v41, %v45_v15  ;;  %v94_v44 = vadd.f32 %v87_v37, %v78_v39  ;;  %v95_v45 = vadd.f32 %v91_v38, %v79_v40 }
 0x145   :  { %v80_v46 = vmul.f32 %v71_v32, %v64_v42  ;;  %v81_v47 = vmul.f32 %v75_v33, %v65_v43  ;;  %98 = vst [vmem:[#allocation5] sm:$0xff] %v94_v44  ;;  %99 = vst [vmem:[#allocation5 + $0x8] sm:$0xff] %v95_v45 }
 0x147   :  { %v96_v48 = vadd.f32 %v87_v37, %v80_v46  ;;  %v97_v49 = vadd.f32 %v91_v38, %v81_v47 }
 0x149   :  { %100 = vst [vmem:[#allocation5 + $0x10] sm:$0xff] %v96_v48  ;;  %101 = vst [vmem:[#allocation5 + $0x18] sm:$0xff] %v97_v49 }
 0x14a   :  { %158 = shalt.err (!%p155_p9)
}
 0x14b   :  { %113 = dma.vmem_to_hbm [thread:$0]  %s108_s1, 512, %s216_s3, [#allocation4], %s172_s15, %s172_s15, %s173_s16  }
 0x14c   :  { %169 = dma.done.wait [#allocation4], 512  }
 0x14d   :  { %170 = vsyncadd [#allocation4], 4294966784 }
 0x14e   :  { %117 = vsyncpa [#allocation3], 1 }
 0x14f   :  { %118 = vsyncpa [#allocation4], 1 }

</bundles_post_ra>
